<compile_context>
chip_gen: v7x
topology: tpu7x:2x2x1
jax: 0.10.0
libtpu: 0.0.40
codegen_flags: <defaults>
</compile_context>

<pallas_src>
import functools
import math

import jax
import jax.numpy as jnp
from jax import lax
from jax.experimental import pallas as pl
from jax.experimental.pallas import tpu as pltpu

BN_EPS = 1e-5


def _round_up(x, m):
    return (x + m - 1) // m * m


# ----------------------------------------------------------------------------
# Fused matmul kernel: (tm,tk)@(tk,Np) with f32 VMEM accumulator over the K
# grid axis; epilogue adds bias (+ optional residual identity), writes bf16
# output and optionally accumulates per-channel sum / sum-of-squares (BN pass 1)
# into resident (1,Np) outputs.
# ----------------------------------------------------------------------------
def _matmul_fused_kernel(*refs, has_identity, compute_stats, m_valid, tm):
    a_ref, b_ref, bias_ref = refs[0], refs[1], refs[2]
    pos = 3
    id_ref = None
    if has_identity:
        id_ref = refs[pos]
        pos += 1
    o_ref = refs[pos]
    pos += 1
    sum_ref = sq_ref = None
    if compute_stats:
        sum_ref, sq_ref = refs[pos], refs[pos + 1]
        pos += 2
    acc_ref = refs[pos]

    i = pl.program_id(0)
    k = pl.program_id(1)

    @pl.when(k == 0)
    def _():
        acc_ref[...] = jnp.zeros_like(acc_ref)

    if compute_stats:
        @pl.when(jnp.logical_and(i == 0, k == 0))
        def _():
            sum_ref[...] = jnp.zeros_like(sum_ref)
            sq_ref[...] = jnp.zeros_like(sq_ref)

    acc_ref[...] += jnp.dot(a_ref[...], b_ref[...],
                            preferred_element_type=jnp.float32)

    @pl.when(k == pl.num_programs(1) - 1)
    def _():
        y = acc_ref[...] + bias_ref[...]
        if has_identity:
            y = y + id_ref[...].astype(jnp.float32)
        o_ref[...] = y.astype(o_ref.dtype)
        if compute_stats:
            yv = y
            if m_valid is not None:
                row = i * tm + lax.broadcasted_iota(jnp.int32, y.shape, 0)
                yv = jnp.where(row < m_valid, y, 0.0)   # mask padded rows
            sum_ref[...] += jnp.sum(yv, axis=0, keepdims=True)
            sq_ref[...] += jnp.sum(yv * yv, axis=0, keepdims=True)


def matmul_bias_fused(a, b, bias, *, identity=None, compute_stats=False,
                      out_dtype=jnp.bfloat16):
    """(M,K)@(K,N)+bias [+identity] -> (M,N) out_dtype [, (sum(N,), sumsq(N,))].

    The weight is held N-resident in VMEM (tn = padded N), so the large
    activation operand streams through HBM exactly once.
    """
    M, K = a.shape
    K2, N = b.shape
    assert K == K2 and bias.shape == (N,)

    Np = _round_up(N, 128)

    # K tiling: keep the whole (padded) K resident when the bf16 weight tile is
    # small (true for all convs in this block); otherwise stream K in tiles.
    if K * Np * 2 <= 4 * 1024 * 1024:
        Kp = _round_up(K, 16)
        tk = Kp
    else:
        tk = 512
        while tk > 128 and tk * Np * 2 > 4 * 1024 * 1024:
            tk //= 2
        Kp = _round_up(K, tk)

    if M <= 512:
        tm = _round_up(M, 8)
        Mp = tm
    else:
        tm = 256
        Mp = _round_up(M, tm)

    def prep(x, shape):
        if x.shape != shape:
            x = jnp.pad(x, [(0, s - d) for d, s in zip(x.shape, shape)])
        return x.astype(jnp.bfloat16)

    a_p = prep(a, (Mp, Kp))
    b_p = prep(b, (Kp, Np))
    bias_p = jnp.pad(bias, (0, Np - N)).reshape(1, Np).astype(jnp.float32)

    operands = [a_p, b_p, bias_p]
    in_specs = [
        pl.BlockSpec((tm, tk), lambda i, k: (i, k)),
        pl.BlockSpec((tk, Np), lambda i, k: (k, 0)),
        pl.BlockSpec((1, Np), lambda i, k: (0, 0)),
    ]
    if identity is not None:
        assert identity.shape == (M, N)
        operands.append(prep(identity, (Mp, Np)))
        in_specs.append(pl.BlockSpec((tm, Np), lambda i, k: (i, 0)))

    out_shapes = [jax.ShapeDtypeStruct((Mp, Np), out_dtype)]
    out_specs = [pl.BlockSpec((tm, Np), lambda i, k: (i, 0))]
    if compute_stats:
        out_shapes += [jax.ShapeDtypeStruct((1, Np), jnp.float32)] * 2
        out_specs += [pl.BlockSpec((1, Np), lambda i, k: (0, 0))] * 2

    kernel = functools.partial(
        _matmul_fused_kernel,
        has_identity=identity is not None,
        compute_stats=compute_stats,
        m_valid=(M if Mp != M else None), tm=tm)

    # The per-channel stats accumulators are resident across the M grid axis, so
    # that axis must stay serial ("arbitrary") when stats are fused; otherwise M
    # can shard across the v7x TensorCores.
    m_sem = "arbitrary" if compute_stats else "parallel"
    results = pl.pallas_call(
        kernel,
        out_shape=tuple(out_shapes),
        grid=(Mp // tm, Kp // tk),
        in_specs=in_specs,
        out_specs=tuple(out_specs),
        scratch_shapes=[pltpu.VMEM((tm, Np), jnp.float32)],
        compiler_params=pltpu.CompilerParams(
            dimension_semantics=(m_sem, "arbitrary"),
            vmem_limit_bytes=32 * 1024 * 1024,
        ),
    )(*operands)

    out = results[0][:M, :N]
    if compute_stats:
        return out, (results[1][0, :N], results[2][0, :N])
    return out, None


# ----------------------------------------------------------------------------
# BatchNorm apply pass (pass-1 stats already fused into the producing matmul):
# y = x * scale + shift (+ ReLU), tiled over M, bf16 in/out, f32 math.
# ----------------------------------------------------------------------------
def _bn_apply_kernel(x_ref, scale_ref, shift_ref, o_ref, *, relu):
    y = x_ref[...].astype(jnp.float32) * scale_ref[...] + shift_ref[...]
    if relu:
        y = jnp.maximum(y, 0.0)
    o_ref[...] = y.astype(o_ref.dtype)


def batchnorm_apply(h, stats, bn_params, *, relu, out_dtype=jnp.bfloat16):
    """h: NHWC; stats = (sum, sumsq) over N*H*W (training-mode batch stats)."""
    N, H, W, C = h.shape
    M = N * H * W
    s, sq = stats
    mean = s / M
    var = jnp.maximum(sq / M - mean * mean, 0.0)       # clamp cancellation
    inv = lax.rsqrt(var + BN_EPS)
    scale = (bn_params["gamma"] * inv).reshape(1, C).astype(jnp.float32)
    shift = (bn_params["beta"] - mean * bn_params["gamma"] * inv
             ).reshape(1, C).astype(jnp.float32)

    x2 = h.reshape(M, C)
    tm = min(_round_up(M, 8), 512)                     # bounded for v5e VMEM
    Mp = _round_up(M, tm)
    if Mp != M:
        x2 = jnp.pad(x2, ((0, Mp - M), (0, 0)))

    # TODO(synk): for narrow-channel configs (C < 128) fold W into the last dim
    # so the output stores are lane-dense; irrelevant for ResNet-sized C.
    out = pl.pallas_call(
        functools.partial(_bn_apply_kernel, relu=relu),
        out_shape=jax.ShapeDtypeStruct((Mp, C), out_dtype),
        grid=(Mp // tm,),
        in_specs=[pl.BlockSpec((tm, C), lambda i: (i, 0)),
                  pl.BlockSpec((1, C), lambda i: (0, 0)),
                  pl.BlockSpec((1, C), lambda i: (0, 0))],
        out_specs=pl.BlockSpec((tm, C), lambda i: (i, 0)),
        compiler_params=pltpu.CompilerParams(
            dimension_semantics=("parallel",),
            vmem_limit_bytes=32 * 1024 * 1024,
        ),
    )(x2, scale, shift)
    return out[:M].reshape(N, H, W, C)


# ----------------------------------------------------------------------------
# JAX glue: bilinear sampling for the deformable convolution
# ----------------------------------------------------------------------------
def bilinear_sample(img, ys, xs):
    """img: [N,H,W,C] bf16; ys/xs: [N,Ho,Wo,P] f32 -> [N,Ho,Wo,P,C] bf16.

    Zero padding outside the image (matches torchvision deform_conv2d)."""
    # TODO(synk): move this gather + weight combine into a Pallas kernel that
    # keeps the padded bf16 image slab VMEM-resident per (batch, row tile) and
    # emits the main-conv A tiles directly, removing this HBM round trip.
    N, H, W, C = img.shape
    y0 = jnp.floor(ys)
    x0 = jnp.floor(xs)

    def corner(yi, xi):
        valid = (yi >= 0) & (yi <= H - 1) & (xi >= 0) & (xi <= W - 1)
        yc = jnp.clip(yi, 0, H - 1).astype(jnp.int32)
        xc = jnp.clip(xi, 0, W - 1).astype(jnp.int32)
        g = jax.vmap(lambda im, a, b: im[a, b])(img, yc, xc)   # [N,Ho,Wo,P,C]
        return g * valid[..., None].astype(img.dtype)

    g00 = corner(y0, x0)
    g01 = corner(y0, x0 + 1.0)
    g10 = corner(y0 + 1.0, x0)
    g11 = corner(y0 + 1.0, x0 + 1.0)
    wy1 = ys - y0
    wy0 = 1.0 - wy1
    wx1 = xs - x0
    wx0 = 1.0 - wx1
    val = (g00 * (wy0 * wx0)[..., None] + g01 * (wy0 * wx1)[..., None]
           + g10 * (wy1 * wx0)[..., None] + g11 * (wy1 * wx1)[..., None])
    return val.astype(jnp.bfloat16)


def deformable_conv2d(x, params, *, k, stride, pad, use_mask,
                      identity=None, compute_stats=False):
    """DCN(v2)-style deformable conv. x: [N,H,W,Cin] bf16 -> [N,Ho,Wo,Cout] bf16.

    Optionally fuses a residual `identity` add and BN pass-1 stats into the main
    matmul epilogue."""
    N, H, W, C = x.shape
    kk = k * k
    ch = (3 if use_mask else 2) * kk

    # --- offset (+mask) conv: tiny narrow-output regular conv; a padded 128-lane
    # Pallas matmul wastes >4x of the MXU + DMA on padding, so leave it to XLA.
    w_off = params["w_off"].reshape(k, k, C, ch).astype(jnp.bfloat16)
    off = lax.conv_general_dilated(
        x, w_off, window_strides=(stride, stride),
        padding=((pad, pad), (pad, pad)),
        dimension_numbers=("NHWC", "HWIO", "NHWC"),
        preferred_element_type=jnp.float32) + params["b_off"]
    Ho, Wo = off.shape[1], off.shape[2]

    # torchvision convention: interleaved (dy_0, dx_0, dy_1, dx_1, ...) then the
    # kk mask logits.
    offset = off[..., :2 * kk].reshape(N, Ho, Wo, kk, 2)
    mod = jax.nn.sigmoid(off[..., 2 * kk:]) if use_mask else None

    # --- bilinear sampling at the offset positions (JAX gather glue, bf16) ---
    hi = (jnp.arange(Ho) * stride - pad).astype(jnp.float32)
    wi = (jnp.arange(Wo) * stride - pad).astype(jnp.float32)
    ki = jnp.arange(k)
    py = jnp.repeat(ki, k).astype(jnp.float32)     # kernel row of position p
    px = jnp.tile(ki, k).astype(jnp.float32)       # kernel col of position p
    ys = hi[None, :, None, None] + py[None, None, None, :] + offset[..., 0]
    xs = wi[None, None, :, None] + px[None, None, None, :] + offset[..., 1]
    sampled = bilinear_sample(x, ys, xs)           # [N,Ho,Wo,kk,C] bf16
    if mod is not None:
        sampled = sampled * mod[..., None].astype(jnp.bfloat16)

    # --- main conv as weight-resident Pallas matmul over the sampled columns ---
    cols = sampled.reshape(N * Ho * Wo, kk * C)
    id_flat = identity.reshape(N * Ho * Wo, -1) if identity is not None else None
    out, stats = matmul_bias_fused(cols, params["w"], params["b"],
                                   identity=id_flat, compute_stats=compute_stats)
    return out.reshape(N, Ho, Wo, -1), stats


# ----------------------------------------------------------------------------
# ResidualBlock forward (matches the PyTorch reference structure exactly:
# shared bn_mid for conv1/conv2 outputs; add -> bn_out -> ReLU at the end)
# ----------------------------------------------------------------------------
def residual_block_forward(x_nchw, params, *, stride, mask, num_block):
    x = jnp.transpose(x_nchw, (0, 2, 3, 1)).astype(jnp.bfloat16)   # NCHW -> NHWC
    out_c = params["conv3"]["w"].shape[1]
    for i in range(num_block):
        identity = x
        if i == 0:
            h, st = deformable_conv2d(x, params["conv1_stride"], k=1,
                                      stride=stride, pad=0, use_mask=mask,
                                      compute_stats=True)
        else:
            h, st = deformable_conv2d(x, params["conv1"], k=1, stride=1, pad=0,
                                      use_mask=mask, compute_stats=True)
        h = batchnorm_apply(h, st, params["bn_mid"], relu=True)

        h, st = deformable_conv2d(h, params["conv2"], k=3, stride=1, pad=1,
                                  use_mask=mask, compute_stats=True)
        h = batchnorm_apply(h, st, params["bn_mid"], relu=True)

        if out_c != identity.shape[-1]:
            if i == 0:
                identity, _ = deformable_conv2d(
                    identity, params["conv_projection_stride"], k=1,
                    stride=stride, pad=0, use_mask=mask)
            else:
                identity, _ = deformable_conv2d(
                    identity, params["conv_projection"], k=1, stride=1, pad=0,
                    use_mask=mask)

        # conv3 with the residual add fused into the matmul epilogue; BN stats
        # of (conv3 + identity) accumulated in the same pass.
        h, st = deformable_conv2d(h, params["conv3"], k=1, stride=1, pad=0,
                                  use_mask=mask, identity=identity,
                                  compute_stats=True)
        x = batchnorm_apply(h, st, params["bn_out"], relu=True)
    return jnp.transpose(x, (0, 3, 1, 2)).astype(jnp.float32)      # NHWC -> NCHW


# ----------------------------------------------------------------------------
# Deterministic parameter initialization (synthetic; shapes per module __init__)
# ----------------------------------------------------------------------------
def init_params(key, in_c, mid_c, out_c, mask):
    def dconv(key, cin, cout, k):
        ch = (3 if mask else 2) * k * k
        k1, k2, k3, k4 = jax.random.split(key, 4)
        fan_in = k * k * cin
        return {
            # offset conv: weight [k*k*cin, ch] (small scale so offsets stay sane)
            "w_off": jax.random.normal(k1, (fan_in, ch), jnp.float32) * 0.01,
            "b_off": jax.random.normal(k2, (ch,), jnp.float32) * 0.01,
            # regular conv weight, column order (kh, kw, cin) matching sampling
            "w": jax.random.normal(k3, (fan_in, cout), jnp.float32) / math.sqrt(fan_in),
            "b": jax.random.normal(k4, (cout,), jnp.float32) * 0.01,
        }

    ks = jax.random.split(key, 6)
    return {
        "conv1_stride": dconv(ks[0], in_c, mid_c, 1),
        "conv1": dconv(ks[1], out_c, mid_c, 1),
        "conv2": dconv(ks[2], mid_c, mid_c, 3),
        "conv3": dconv(ks[3], mid_c, out_c, 1),
        "conv_projection": dconv(ks[4], in_c, out_c, 1),
        "conv_projection_stride": dconv(ks[5], in_c, out_c, 1),
        # BatchNorm default init: gamma=1, beta=0
        "bn_mid": {"gamma": jnp.ones((mid_c,), jnp.float32),
                   "beta": jnp.zeros((mid_c,), jnp.float32)},
        "bn_out": {"gamma": jnp.ones((out_c,), jnp.float32),
                   "beta": jnp.zeros((out_c,), jnp.float32)},
    }


if __name__ == "__main__":
    key = jax.random.PRNGKey(0)
    kx, kp = jax.random.split(key)

    # small shapes consistent with the module
    N, Cin, H, W = 2, 4, 16, 16
    mid_c, out_c = 4, 8
    stride, mask, num_block = 2, True, 2

    x = jax.random.normal(kx, (N, Cin, H, W), jnp.float32)  # NCHW like PyTorch
    params = init_params(kp, Cin, mid_c, out_c, mask)

    y = residual_block_forward(x, params, stride=stride, mask=mask,
                               num_block=num_block)
    jax.block_until_ready(y)
    assert y.shape == (N, out_c, H // stride, W // stride)
    print("KERNEL_OK")
</pallas_src>

<mosaic_0001>
module attributes {stable_mosaic.version = 11 : i64} {
  func.func @_matmul_fused_kernel(%arg0: i32, %arg1: i32, %arg2: memref<128x16xbf16, #tpu.memory_space<vmem>>, %arg3: memref<16x128xbf16, #tpu.memory_space<vmem>>, %arg4: memref<1x128xf32, #tpu.memory_space<vmem>>, %arg5: memref<128x128xbf16, #tpu.memory_space<vmem>>, %arg6: memref<1x128xf32, #tpu.memory_space<vmem>>, %arg7: memref<1x128xf32, #tpu.memory_space<vmem>>, %arg8: memref<128x128xf32, #tpu.memory_space<vmem>>) attributes {dimension_semantics = [#tpu.dimension_semantics<arbitrary>, #tpu.dimension_semantics<arbitrary>], iteration_bounds = array<i64: 1, 1>, scalar_prefetch = 0 : i64, scratch_operands = 1 : i64, tpu.core_type = #tpu.core_type<tc>, window_params = [{transform_indices = @transform_0, window_bounds = array<i64: 128, 16>}, {transform_indices = @transform_1, window_bounds = array<i64: 16, 128>}, {pipeline_mode = #tpu.pipeline_mode<synchronous>, transform_indices = @transform_2, window_bounds = array<i64: 1, 128>}, {transform_indices = @transform_3, window_bounds = array<i64: 128, 128>}, {pipeline_mode = #tpu.pipeline_mode<synchronous>, transform_indices = @transform_4, window_bounds = array<i64: 1, 128>}, {pipeline_mode = #tpu.pipeline_mode<synchronous>, transform_indices = @transform_5, window_bounds = array<i64: 1, 128>}]} {
    %c0_i32 = arith.constant 0 : i32
    %0 = arith.cmpi eq, %arg1, %c0_i32 : i32
    %1 = arith.extui %0 : i1 to i32
    %c0_i32_0 = arith.constant 0 : i32
    %2 = arith.cmpi ne, %1, %c0_i32_0 : i32
    scf.if %2 {
      %cst_13 = arith.constant 0.000000e+00 : f32
      %17 = vector.broadcast %cst_13 : f32 to vector<128x128xf32>
      %c0_14 = arith.constant 0 : index
      %c0_15 = arith.constant 0 : index
      %18 = vector.load %arg8[%c0_14, %c0_15] : memref<128x128xf32, #tpu.memory_space<vmem>>, vector<128x128xf32>
      tpu.vector_store %arg8[%c0_14, %c0_15], %17 {strides = array<i32>} : memref<128x128xf32, #tpu.memory_space<vmem>>, vector<128x128xf32>,
    } else {
    }
    %c0_i32_1 = arith.constant 0 : i32
    %3 = arith.cmpi eq, %arg0, %c0_i32_1 : i32
    %c0_i32_2 = arith.constant 0 : i32
    %4 = arith.cmpi eq, %arg1, %c0_i32_2 : i32
    %5 = arith.andi %3, %4 : i1
    %6 = arith.extui %5 : i1 to i32
    %c0_i32_3 = arith.constant 0 : i32
    %7 = arith.cmpi ne, %6, %c0_i32_3 : i32
    scf.if %7 {
      %cst_13 = arith.constant 0.000000e+00 : f32
      %17 = vector.broadcast %cst_13 : f32 to vector<1x128xf32>
      %c0_14 = arith.constant 0 : index
      %c0_15 = arith.constant 0 : index
      %18 = vector.load %arg6[%c0_14, %c0_15] : memref<1x128xf32, #tpu.memory_space<vmem>>, vector<1x128xf32>
      tpu.vector_store %arg6[%c0_14, %c0_15], %17 {strides = array<i32>} : memref<1x128xf32, #tpu.memory_space<vmem>>, vector<1x128xf32>,
      %cst_16 = arith.constant 0.000000e+00 : f32
      %19 = vector.broadcast %cst_16 : f32 to vector<1x128xf32>
      %c0_17 = arith.constant 0 : index
      %c0_18 = arith.constant 0 : index
      %20 = vector.load %arg7[%c0_17, %c0_18] : memref<1x128xf32, #tpu.memory_space<vmem>>, vector<1x128xf32>
      tpu.vector_store %arg7[%c0_17, %c0_18], %19 {strides = array<i32>} : memref<1x128xf32, #tpu.memory_space<vmem>>, vector<1x128xf32>,
    } else {
    }
    %c0 = arith.constant 0 : index
    %c0_4 = arith.constant 0 : index
    %8 = vector.load %arg8[%c0, %c0_4] : memref<128x128xf32, #tpu.memory_space<vmem>>, vector<128x128xf32>
    %c0_5 = arith.constant 0 : index
    %c0_6 = arith.constant 0 : index
    %9 = vector.load %arg2[%c0_5, %c0_6] : memref<128x16xbf16, #tpu.memory_space<vmem>>, vector<128x16xbf16>
    %c0_7 = arith.constant 0 : index
    %c0_8 = arith.constant 0 : index
    %10 = vector.load %arg3[%c0_7, %c0_8] : memref<16x128xbf16, #tpu.memory_space<vmem>>, vector<16x128xbf16>
    %cst = arith.constant dense<0.000000e+00> : vector<128x128xf32>
    %11 = tpu.matmul %9, %10, %cst {dimension_numbers = #tpu.dot_dimension_numbers<[1], [0], [0], [1], [0, 0, 1, 1], [], []>} : vector<128x16xbf16>, vector<16x128xbf16>, vector<128x128xf32> -> vector<128x128xf32>
    %12 = arith.addf %8, %11 : vector<128x128xf32>
    %c0_9 = arith.constant 0 : index
    %c0_10 = arith.constant 0 : index
    %13 = vector.load %arg8[%c0_9, %c0_10] : memref<128x128xf32, #tpu.memory_space<vmem>>, vector<128x128xf32>
    tpu.vector_store %arg8[%c0_9, %c0_10], %12 {strides = array<i32>} : memref<128x128xf32, #tpu.memory_space<vmem>>, vector<128x128xf32>,
    %c0_i32_11 = arith.constant 0 : i32
    %14 = arith.cmpi eq, %arg1, %c0_i32_11 : i32
    %15 = arith.extui %14 : i1 to i32
    %c0_i32_12 = arith.constant 0 : i32
    %16 = arith.cmpi ne, %15, %c0_i32_12 : i32
    scf.if %16 {
      %c0_13 = arith.constant 0 : index
      %c0_14 = arith.constant 0 : index
      %17 = vector.load %arg8[%c0_13, %c0_14] : memref<128x128xf32, #tpu.memory_space<vmem>>, vector<128x128xf32>
      %c0_15 = arith.constant 0 : index
      %c0_16 = arith.constant 0 : index
      %18 = vector.load %arg4[%c0_15, %c0_16] : memref<1x128xf32, #tpu.memory_space<vmem>>, vector<1x128xf32>
      %19 = vector.broadcast %18 : vector<1x128xf32> to vector<128x128xf32>
      %20 = arith.addf %17, %19 : vector<128x128xf32>
      %21 = arith.truncf %20 : vector<128x128xf32> to vector<128x128xbf16>
      %c0_17 = arith.constant 0 : index
      %c0_18 = arith.constant 0 : index
      %22 = vector.load %arg5[%c0_17, %c0_18] : memref<128x128xbf16, #tpu.memory_space<vmem>>, vector<128x128xbf16>
      tpu.vector_store %arg5[%c0_17, %c0_18], %21 {strides = array<i32>} : memref<128x128xbf16, #tpu.memory_space<vmem>>, vector<128x128xbf16>,
      %c0_19 = arith.constant 0 : index
      %c0_20 = arith.constant 0 : index
      %23 = vector.load %arg6[%c0_19, %c0_20] : memref<1x128xf32, #tpu.memory_space<vmem>>, vector<1x128xf32>
      %cst_21 = arith.constant dense<0.000000e+00> : vector<128xf32>
      %24 = vector.multi_reduction <add>, %20, %cst_21 [0] : vector<128x128xf32> to vector<128xf32>
      %25 = vector.shape_cast %24 : vector<128xf32> to vector<1x128xf32>
      %26 = arith.addf %23, %25 : vector<1x128xf32>
      %c0_22 = arith.constant 0 : index
      %c0_23 = arith.constant 0 : index
      %27 = vector.load %arg6[%c0_22, %c0_23] : memref<1x128xf32, #tpu.memory_space<vmem>>, vector<1x128xf32>
      tpu.vector_store %arg6[%c0_22, %c0_23], %26 {strides = array<i32>} : memref<1x128xf32, #tpu.memory_space<vmem>>, vector<1x128xf32>,
      %c0_24 = arith.constant 0 : index
      %c0_25 = arith.constant 0 : index
      %28 = vector.load %arg7[%c0_24, %c0_25] : memref<1x128xf32, #tpu.memory_space<vmem>>, vector<1x128xf32>
      %29 = arith.mulf %20, %20 : vector<128x128xf32>
      %cst_26 = arith.constant dense<0.000000e+00> : vector<128xf32>
      %30 = vector.multi_reduction <add>, %29, %cst_26 [0] : vector<128x128xf32> to vector<128xf32>
      %31 = vector.shape_cast %30 : vector<128xf32> to vector<1x128xf32>
      %32 = arith.addf %28, %31 : vector<1x128xf32>
      %c0_27 = arith.constant 0 : index
      %c0_28 = arith.constant 0 : index
      %33 = vector.load %arg7[%c0_27, %c0_28] : memref<1x128xf32, #tpu.memory_space<vmem>>, vector<1x128xf32>
      tpu.vector_store %arg7[%c0_27, %c0_28], %32 {strides = array<i32>} : memref<1x128xf32, #tpu.memory_space<vmem>>, vector<1x128xf32>,
    } else {
    }
    return
  }
  func.func @transform_0(%arg0: i32, %arg1: i32) -> (i32, i32) {
    %c0_i32 = arith.constant 0 : i32
    return %arg0, %arg1 : i32, i32
  }
  func.func @transform_1(%arg0: i32, %arg1: i32) -> (i32, i32) {
    %c0_i32 = arith.constant 0 : i32
    %c0_i32_0 = arith.constant 0 : i32
    return %arg1, %c0_i32 : i32, i32
  }
  func.func @transform_2(%arg0: i32, %arg1: i32) -> (i32, i32) {
    %c0_i32 = arith.constant 0 : i32
    %c0_i32_0 = arith.constant 0 : i32
    %c0_i32_1 = arith.constant 0 : i32
    return %c0_i32, %c0_i32_0 : i32, i32
  }
  func.func @transform_3(%arg0: i32, %arg1: i32) -> (i32, i32) {
    %c0_i32 = arith.constant 0 : i32
    %c0_i32_0 = arith.constant 0 : i32
    return %arg0, %c0_i32 : i32, i32
  }
  func.func @transform_4(%arg0: i32, %arg1: i32) -> (i32, i32) {
    %c0_i32 = arith.constant 0 : i32
    %c0_i32_0 = arith.constant 0 : i32
    %c0_i32_1 = arith.constant 0 : i32
    return %c0_i32, %c0_i32_0 : i32, i32
  }
  func.func @transform_5(%arg0: i32, %arg1: i32) -> (i32, i32) {
    %c0_i32 = arith.constant 0 : i32
    %c0_i32_0 = arith.constant 0 : i32
    %c0_i32_1 = arith.constant 0 : i32
    return %c0_i32, %c0_i32_0 : i32, i32
  }
}

</mosaic_0001>

<bundles_post_ra>
// kernel: tpu_custom_call.1
= control target key start
LH: loop header
LB: loop body
LE: loop exit
PB: predicated region body
PF: predicated region fallthrough
CT: control target
= control target key end

     0   :  { %11 = vsyncpa [#allocation4], 0  ;;  %vm127_vm0 = vcmask 130048   ;;  %s857_s0 = inlined_call_operand.vmem [shape: bf16[128,16], index: 0, kind: input, shape index: {}]   ;;  %s858_s1 = inlined_call_operand.vmem [shape: bf16[16,128], index: 1, kind: input, shape index: {}]   ;;  %s859_s2 = inlined_call_operand.vmem [shape: f32[1,128], index: 2, kind: input, shape index: {}]   ;;  %s860_s3 = inlined_call_operand.hbm [shape: bf16[128,128], index: 3, kind: output, shape index: {0}]   ;;  %s861_s4 = inlined_call_operand.hbm [shape: f32[1,128], index: 4, kind: output, shape index: {1}]   ;;  %s862_s5 = inlined_call_operand.hbm [shape: f32[1,128], index: 5, kind: output, shape index: {2}]  }
   0x1   :  { %v642_v0 = vld [vmem:[%s858_s1] sm:$0xff]   ;;  %v644_v2 = vld [vmem:[%s857_s0 + $0x8] sm:$0xff]   ;;  %v645_v3 = vld [vmem:[%s857_s0 + $0x10] sm:$0xff]  }
   0x2   :  { %v643_v1 = vld [vmem:[%s857_s0] sm:$0xff]   ;;  %616 = vmatprep.subr.bf16.mxu0 %v642_v0  ;;  %634 = vmatprep.subr.bf16.mxu1 %v642_v0  ;;  %v648_v5 = vld [vmem:[%s857_s0 + $0x28] sm:$0xff]   ;;  %v649_v6 = vld [vmem:[%s857_s0 + $0x30] sm:$0xff]  }
   0x3   :  { %617 = vmatpush3.bf16.msra.mxu0 %v642_v0  ;;  %618 = vmatprep.mubr.msk.bf16.mxu0 %vm127_vm0, %v643_v1  ;;  %v647_v4 = vld [vmem:[%s857_s0 + $0x20] sm:$0xff]  }
   0x4   :  { %635 = vmatpush3.bf16.msra.mxu1 %v642_v0  ;;  %626 = vmatprep.mubr.msk.bf16.mxu1 %vm127_vm0, %v647_v4 }
   0x6   :  { %619 = vmatmul.mubr.msk.bf16.vlgmr.msra.gmra.mrb[0].mxu0 %vm127_vm0, %v644_v2 }
   0x7   :  { %622 = vmatprep.mubr.msk.bf16.mxu0 %vm127_vm0, %v645_v3  ;;  %627 = vmatmul.mubr.msk.bf16.vlgmr.msra.gmra.mrb[0].mxu1 %vm127_vm0, %v648_v5 }
   0x8   :  { %630 = vmatprep.mubr.msk.bf16.mxu1 %vm127_vm0, %v649_v6 }
   0x9   :  { %12 = vsyncpa [#allocation6], 0  ;;  %v646_v7 = vld [vmem:[%s857_s0 + $0x18] sm:$0xff]   ;;  %v721_v9 = vmov 0.0   ;;  %v527_v10 = vld [vmem:[%s859_s2] ss:$0 sm:$0xff] }
   0xa   :  { %v650_v8 = vld [vmem:[%s857_s0 + $0x38] sm:$0xff]   ;;  %45 = vst [vmem:[#allocation5] sm:$0x1] %v721_v9  ;;  %46 = vst [vmem:[#allocation7] sm:$0x1] %v721_v9  ;;  %s722_s0 = smov [#allocation3]  }
   0xb   :  { %s472_s2 = sshll.u32 %s722_s0, 4  ;;  %s473_s2 = int_to_ptr.vmem [resolvable:$true] %s472_s2 }
   0xc   :  { %s651_s12 = scalar_lea.vmem %s473_s2, 1024  ;;  %p656_p1 = scmp.lt.s32.totalorder %s473_s2, %s473_s2 }
   0xd   :  { %p652_p0 = scmp.ne.s32.totalorder %s473_s2, %s651_s12  ;;  %p657_p2 = scmp.lt.s32.totalorder %s651_s12, %s651_s12 }
   0xe   :  { %623 = vmatmul.mubr.msk.bf16.gmra.mrb[4].mxu0 %vm127_vm0, %v646_v7 }
   0xf   :  { %631 = vmatmul.mubr.msk.bf16.gmra.mrb[4].mxu1 %vm127_vm0, %v650_v8  ;;  %p658_p3 = por %p657_p2, %p656_p1 }
  0x11   :  { %p659_p4 = pnand %p658_p3, %p652_p0 }
  0xd9   :  { %v620_v11 = vpop.f32.mrb[0].mxu0 }
  0xda   :  { %v186_v12 = vpop.f32.mrb[1].mxu0  ;;  %v628_v15 = vpop.f32.mrb[0].mxu1  ;;  %v309_v16 = vadd.f32 %v620_v11, %v527_v10 }
  0xdb   :  { %v307_v13 = vadd.f32 %v527_v10, %v186_v12  ;;  %v621_v14 = vpop.f32.mrb[2].mxu0  ;;  %v795_v19 = vadd.f32 %v628_v15, %v527_v10  ;;  %v218_v20 = vpop.f32.mrb[1].mxu1 }
  0xdc   :  { %v310_v17 = vadd.f32 %v621_v14, %v527_v10  ;;  %v189_v18 = vpop.f32.mrb[3].mxu0  ;;  %v629_v22 = vpop.f32.mrb[2].mxu1  ;;  %v315_v24 = vadd.f32 %v527_v10, %v218_v20  ;;  %v430_v33 = vmul.f32 %v309_v16, %v309_v16 }
  0xdd   :  { %v308_v21 = vadd.f32 %v527_v10, %v189_v18  ;;  %v797_v25 = vadd.f32 %v629_v22, %v527_v10  ;;  %v221_v26 = vpop.f32.mrb[3].mxu1  ;;  %v428_v27 = vmul.f32 %v307_v13, %v307_v13 }
  0xde   :  { %v568_v23 = vpack.c.bf16 %v310_v17, %v309_v16  ;;  %v801_v32 = vadd.f32 %v527_v10, %v221_v26  ;;  %v431_v39 = vmul.f32 %v310_v17, %v310_v17  ;;  %v436_v8 = vmul.f32 %v315_v24, %v315_v24 }
  0xdf   :  { %v563_v28 = vpack.c.bf16 %v308_v21, %v307_v13  ;;  %v404_v29 = vadd.f32 %v308_v21, %v307_v13  ;;  %v429_v30 = vmul.f32 %v308_v21, %v308_v21  ;;  %v588_v31 = vpack.c.bf16 %v797_v25, %v795_v19 }
  0xe0   :  { %600 = vst [vmem:[#allocation3 + $0x8] sm:$0xff] %v568_v23   ;;  %v583_v38 = vpack.c.bf16 %v801_v32, %v315_v24 }
  0xe1   :  { %564 = vst [vmem:[#allocation3] sm:$0xff] %v563_v28   ;;  %v405_v34 = vadd.f32 %v404_v29, %v309_v16  ;;  %v444_v35 = vadd.f32 %v429_v30, %v428_v27  ;;  %v624_v36 = vpop.f32.mrb[4].mxu0  ;;  %604 = vst [vmem:[#allocation3 + $0x28] sm:$0xff] %v588_v31  }
  0xe2   :  { %v202_v37 = vpop.f32.mrb[5].mxu0  ;;  %v632_v44 = vpop.f32.mrb[4].mxu1  ;;  %v313_v45 = vadd.f32 %v624_v36, %v527_v10  ;;  %603 = vst [vmem:[#allocation3 + $0x20] sm:$0xff] %v583_v38  }
  0xe3   :  { %v445_v40 = vadd.f32 %v444_v35, %v430_v33  ;;  %v311_v41 = vadd.f32 %v527_v10, %v202_v37  ;;  %v406_v42 = vadd.f32 %v405_v34, %v310_v17  ;;  %v625_v43 = vpop.f32.mrb[6].mxu0  ;;  %v234_v48 = vpop.f32.mrb[5].mxu1  ;;  %v321_v55 = vadd.f32 %v632_v44, %v527_v10 }
  0xe4   :  { %v314_v46 = vadd.f32 %v625_v43, %v527_v10  ;;  %v205_v47 = vpop.f32.mrb[7].mxu0  ;;  %v633_v53 = vpop.f32.mrb[6].mxu1  ;;  %v319_v56 = vadd.f32 %v527_v10, %v234_v48  ;;  %v434_v0 = vmul.f32 %v313_v45, %v313_v45 }
  0xe5   :  { %v407_v49 = vadd.f32 %v406_v42, %v311_v41  ;;  %v432_v50 = vmul.f32 %v311_v41, %v311_v41  ;;  %v446_v51 = vadd.f32 %v445_v40, %v431_v39  ;;  %v312_v52 = vadd.f32 %v527_v10, %v205_v47  ;;  %v237_v57 = vpop.f32.mrb[7].mxu1 }
  0xe6   :  { %v578_v54 = vpack.c.bf16 %v314_v46, %v313_v45  ;;  %v322_v62 = vadd.f32 %v633_v53, %v527_v10  ;;  %v320_v63 = vadd.f32 %v527_v10, %v237_v57  ;;  %v435_v5 = vmul.f32 %v314_v46, %v314_v46 }
  0xe7   :  { %v447_v58 = vadd.f32 %v446_v51, %v432_v50  ;;  %v573_v59 = vpack.c.bf16 %v312_v52, %v311_v41  ;;  %v408_v60 = vadd.f32 %v407_v49, %v312_v52  ;;  %v433_v61 = vmul.f32 %v312_v52, %v312_v52 }
  0xe8   :  { %602 = vst [vmem:[#allocation3 + $0x18] sm:$0xff] %v578_v54   ;;  %v598_v3 = vpack.c.bf16 %v322_v62, %v321_v55  ;;  %v593_v4 = vpack.c.bf16 %v320_v63, %v319_v56 }
  0xe9   :  { %601 = vst [vmem:[#allocation3 + $0x10] sm:$0xff] %v573_v59   ;;  %v409_v1 = vadd.f32 %v408_v60, %v313_v45  ;;  %v448_v2 = vadd.f32 %v447_v58, %v433_v61 }
  0xea   :  { %606 = vst [vmem:[#allocation3 + $0x38] sm:$0xff] %v598_v3   ;;  %605 = vst [vmem:[#allocation3 + $0x30] sm:$0xff] %v593_v4  }
  0xeb   :  { %v449_v6 = vadd.f32 %v448_v2, %v434_v0  ;;  %v410_v7 = vadd.f32 %v409_v1, %v314_v46 }
  0xed   :  { %v411_v9 = vadd.f32 %v410_v7, %v315_v24  ;;  %v450_v11 = vadd.f32 %v449_v6, %v435_v5 }
  0xee   :  { %662 = shalt.err (!%p659_p4)
}
  0xef   :  { %s663_s15 = scalar_lea.hbm %s860_s3, 1024 }
  0xf0   :  { %p664_p5 = scmp.ne.s32.totalorder %s860_s3, %s663_s15  ;;  %p667_p6 = scmp.lt.u32.totalorder %s663_s15, %s860_s3 }
  0xf2   :  { %p669_p7 = pnand %p667_p6, %p664_p5 }
  0xf4   :  { %672 = shalt.err (!%p669_p7)
}
  0xf5   :  { %s723_s20 = smov 64   ;;  %s724_s21 = smov 4   ;;  %v451_v10 = vadd.f32 %v450_v11, %v436_v8  ;;  %v412_v12 = vadd.f32 %v411_v9, %v801_v32  ;;  %v437_v13 = vmul.f32 %v801_v32, %v801_v32  ;;  %v438_v14 = vmul.f32 %v795_v19, %v795_v19  ;;  %v403_v42 = vld [vmem:[#allocation5] sm:$0x1]  ;;  %v427_v45 = vld [vmem:[#allocation7] sm:$0x1] }
  0xf6   :  { %478 = dma.vmem_to_hbm [thread:$0]  %s473_s2, 1024, %s860_s3, [#allocation4], %s723_s20, %s723_s20, %s724_s21   ;;  %v439_v17 = vmul.f32 %v797_v25, %v797_v25  ;;  %v440_v21 = vmul.f32 %v319_v56, %v319_v56  ;;  %v441_v27 = vmul.f32 %v320_v63, %v320_v63  ;;  %v442_v28 = vmul.f32 %v321_v55, %v321_v55 }
  0xf7   :  { %v413_v15 = vadd.f32 %v412_v12, %v795_v19  ;;  %v452_v16 = vadd.f32 %v451_v10, %v437_v13  ;;  %v443_v31 = vmul.f32 %v322_v62, %v322_v62  ;;  %s725_s3 = smov [#allocation5]   ;;  %s726_s25 = smov [#allocation7]  }
  0xf8   :  { %s485_s24 = sshll.u32 %s725_s3, 4  ;;  %s495_s1 = sshll.u32 %s726_s25, 4  ;;  %s486_s24 = int_to_ptr.vmem [resolvable:$true] %s485_s24  ;;  %s825_s1 = int_to_ptr.vmem [resolvable:$true] %s495_s1 }
  0xf9   :  { %v453_v18 = vadd.f32 %v452_v16, %v438_v14  ;;  %v414_v20 = vadd.f32 %v413_v15, %v797_v25  ;;  %s673_s26 = scalar_lea.vmem %s486_s24, 16  ;;  %s677_s27 = scalar_lea.vmem %s486_s24, 32 }
  0xfa   :  { %p674_p8 = scmp.ne.s32.totalorder %s486_s24, %s673_s26  ;;  %p678_p9 = scmp.lt.s32.totalorder %s486_s24, %s486_s24 }
  0xfb   :  { %v415_v22 = vadd.f32 %v414_v20, %v319_v56  ;;  %v454_v23 = vadd.f32 %v453_v18, %v439_v17  ;;  %p679_p10 = scmp.lt.s32.totalorder %s677_s27, %s673_s26 }
  0xfd   :  { %v455_v24 = vadd.f32 %v454_v23, %v440_v21  ;;  %v416_v26 = vadd.f32 %v415_v22, %v320_v63  ;;  %p680_p11 = por %p679_p10, %p678_p9 }
  0xff   :  { %v417_v29 = vadd.f32 %v416_v26, %v321_v55  ;;  %v456_v30 = vadd.f32 %v455_v24, %v441_v27  ;;  %p681_p12 = pnand %p680_p11, %p674_p8 }
 0x101   :  { %v418_v32 = vadd.f32 %v417_v29, %v322_v62  ;;  %v457_v33 = vadd.f32 %v456_v30, %v442_v28 }
 0x103   :  { %v419_v19 = vrot.slane %v418_v32, 4  ;;  %v458_v34 = vadd.f32 %v457_v33, %v443_v31 }
 0x105   :  { %v420_v35 = vadd.f32 %v419_v19, %v418_v32  ;;  %v459_v36 = vrot.slane %v458_v34, 4 }
 0x107   :  { %v421_v37 = vrot.slane %v420_v35, 2  ;;  %v460_v38 = vadd.f32 %v459_v36, %v458_v34 }
 0x109   :  { %v422_v39 = vadd.f32 %v421_v37, %v420_v35  ;;  %v461_v25 = vrot.slane %v460_v38, 2 }
 0x10b   :  { %v423_v40 = vrot.slane %v422_v39, 1  ;;  %v462_v41 = vadd.f32 %v461_v25, %v460_v38 }
 0x10d   :  { %v424_v43 = vadd.f32 %v423_v40, %v422_v39  ;;  %v463_v44 = vrot.slane %v462_v41, 1 }
 0x10f   :  { %v425_v46 = vadd.f32 %v424_v43, %v403_v42  ;;  %v464_v47 = vadd.f32 %v463_v44, %v462_v41 }
 0x111   :  { %426 = vst [vmem:[#allocation5] sm:$0x1] %v425_v46  ;;  %v465_v48 = vadd.f32 %v464_v47, %v427_v45 }
 0x112   :  { %684 = shalt.err (!%p681_p12)
}
 0x113   :  { %s685_s30 = scalar_lea.hbm %s861_s4, 16 }
 0x114   :  { %p686_p13 = scmp.ne.s32.totalorder %s861_s4, %s685_s30  ;;  %p689_p0 = scmp.lt.u32.totalorder %s685_s30, %s861_s4 }
 0x116   :  { %p691_p1 = pnand %p689_p0, %p686_p13 }
 0x118   :  { %694 = shalt.err (!%p691_p1)
}
 0x119   :  { %488 = dma.vmem_to_hbm [thread:$0]  %s486_s24, 16, %s861_s4, [#allocation6]   ;;  %466 = vst [vmem:[#allocation7] sm:$0x1] %v465_v48 }
 0x11a   :  { %s695_s0 = scalar_lea.vmem %s825_s1, 16  ;;  %s699_s2 = scalar_lea.vmem %s825_s1, 32 }
 0x11b   :  { %p696_p2 = scmp.ne.s32.totalorder %s825_s1, %s695_s0  ;;  %p700_p3 = scmp.lt.s32.totalorder %s825_s1, %s825_s1 }
 0x11c   :  { %p701_p4 = scmp.lt.s32.totalorder %s699_s2, %s695_s0 }
 0x11e   :  { %p702_p5 = por %p701_p4, %p700_p3 }
 0x120   :  { %p703_p6 = pnand %p702_p5, %p696_p2 }
 0x122   :  { %706 = shalt.err (!%p703_p6)
}
 0x123   :  { %s707_s14 = scalar_lea.hbm %s862_s5, 16 }
 0x124   :  { %p708_p7 = scmp.ne.s32.totalorder %s862_s5, %s707_s14  ;;  %p711_p8 = scmp.lt.u32.totalorder %s707_s14, %s862_s5 }
 0x126   :  { %p713_p9 = pnand %p711_p8, %p708_p7 }
 0x128   :  { %716 = shalt.err (!%p713_p9)
}
 0x129   :  { %498 = dma.vmem_to_hbm [thread:$0]  %s825_s1, 16, %s862_s5, [#allocation6]  }
 0x12a   :  { %717 = dma.done.wait [#allocation4], 1024  }
 0x12b   :  { %718 = vsyncadd [#allocation4], 4294966272 }
 0x12c   :  { %719 = dma.done.wait [#allocation6], 32  }
 0x12d   :  { %720 = vsyncadd [#allocation6], 4294967264 }
 0x12e   :  { %508 = vsyncpa [#allocation4], 1 }
 0x12f   :  { %509 = vsyncpa [#allocation6], 1 }

</bundles_post_ra>
